<compile_context>
chip_gen: v6e
topology: v6e:2x2x1
jax: 0.10.0
libtpu: 0.0.40
codegen_flags: <defaults>
</compile_context>

<pallas_src>
import functools
import math

import jax
import jax.nn as jnn
import jax.numpy as jnp
from jax import lax
from jax.experimental import pallas as pl
from jax.experimental.pallas import tpu as pltpu

# ---- module hyper-parameters (defaults of VoiceConvertor) ----
N_FFT = 256
N_FREQ = N_FFT // 2 + 1          # 129
CH = 256                         # residual channels (lane-dense)
BOTTLENECK = 4                   # content-condition channels
D_SPK = 128                      # speaker-condition channels
NUM_LAYERS = 8
K = 5                            # conv1/conv2 kernel size (padding=2, reflect)
EPS = 1e-4                       # ChannelNorm eps
MAX_T = 10000                    # TimeEncoding1d max_timesteps
_SQRT_HALF = 0.7071067811865476


def _cdiv(a, b):
    return -(-a // b)


def _round_up(a, b):
    return _cdiv(a, b) * b


# ------------------------------------------------------------------
# hardware probes (cached)
# ------------------------------------------------------------------
_VMEM_LIMIT = None


def _vmem_limit_bytes():
    """~7/8 of per-core VMEM: ~56 MiB on v7x, ~112 MiB on v5e/v6e."""
    global _VMEM_LIMIT
    if _VMEM_LIMIT is None:
        try:
            phys = int(pltpu.get_tpu_info().vmem_capacity_bytes)
        except Exception:
            phys = 64 * 1024 * 1024                      # conservative fallback
        _VMEM_LIMIT = min(max(phys * 7 // 8, 48 * 1024 * 1024), 112 * 1024 * 1024)
    return _VMEM_LIMIT


def _roll_probe_kernel(x_ref, o_ref):
    o_ref[...] = pltpu.roll(x_ref[...], 1, axis=0)


_ROLL_SIGN = None


def _roll_sign():
    """+1 if pltpu.roll follows jnp.roll's convention (out[i] = in[i - shift])."""
    global _ROLL_SIGN
    if _ROLL_SIGN is None:
        x = jnp.broadcast_to(jnp.arange(8, dtype=jnp.float32)[:, None], (8, 128))
        y = pl.pallas_call(_roll_probe_kernel,
                           out_shape=jax.ShapeDtypeStruct((8, 128), jnp.float32))(x)
        _ROLL_SIGN = 1 if int(jax.device_get(y[0, 0])) == 7 else -1
    return _ROLL_SIGN


# ------------------------------------------------------------------
# in-kernel helpers
# ------------------------------------------------------------------
def _erf(x):
    # Abramowitz & Stegun 7.1.26.  The division seed comes from the EUP (approx
    # reciprocal) and is refined with one Newton step: EUP offload, ~f32 accuracy.
    p = 0.3275911
    a1, a2, a3, a4, a5 = (0.254829592, -0.284496736, 1.421413741,
                          -1.453152027, 1.061405429)
    s = jnp.sign(x)
    ax = jnp.abs(x)
    d = 1.0 + p * ax
    t = pl.reciprocal(d, approx=True)
    t = t * (2.0 - d * t)
    poly = ((((a5 * t + a4) * t + a3) * t + a2) * t + a1) * t
    return s * (1.0 - poly * jnp.exp(-ax * ax))


def _gelu_exact(x):
    # nn.GELU() default (erf-based)
    return 0.5 * x * (1.0 + _erf(x * _SQRT_HALF))


def _roll_rows(v, shift, roll_sign):
    """out[r] = v[(r - shift) % M] (jnp.roll convention), direction-corrected."""
    m = v.shape[0]
    s = (roll_sign * shift) % m
    return v if s == 0 else pltpu.roll(v, s, axis=0)


def _conv5_reflect(h, w_ref, b_ref, layer, *, Bb, T, T_pad, roll_sign):
    """Conv1d(CH, CH, k=5, stride=1, pad=2, padding_mode='reflect').

    h is the flat (Bb * T_pad, CH) f32 activation (Bb folded batch elements, each
    T_pad rows; rows [T, T_pad) of an element are don't-care padding).

    Main path: cast h to bf16 once; for each tap do an MXU matmul and circular-shift
    the f32 product on the XLU (roll commutes with a row-wise matmul); accumulate in
    f32.  The 4 boundary rows of every element (rows 0, 1, T-2, T-1), where the flat
    circular shift differs from reflect padding, are fixed by two small MXU matmuls
    that compute both the wrong (circular) and right (reflect) tap contributions and
    swap them in f32.
    """
    M = h.shape[0]
    hb = h.astype(jnp.bfloat16)                      # single f32->bf16 cast per conv

    acc = None
    for k in range(K):
        wk = w_ref[layer, pl.ds(k * CH, CH), :]                       # (CH, CH) bf16
        p = jnp.dot(hb, wk, preferred_element_type=jnp.float32)      # (M, CH) f32
        p = _roll_rows(p, 2 - k, roll_sign)          # p[r] -> hb[(r + k - 2) % M] @ Wk
        acc = p if acc is None else acc + p

    # --- reflect-boundary corrections, per folded batch element ---
    def row(j):
        j = j % M
        return h[j:j + 1]                            # (1, CH) f32

    zero = jnp.zeros((1, CH), h.dtype)
    r0p, r1p, r0n, r1n = [], [], [], []              # rows 0 / 1 (left edge)
    r2p, r3p, r2n, r3n = [], [], [], []              # rows T-2 / T-1 (right edge)
    for b in range(Bb):
        base = b * T_pad
        rA, rB = row(base + 2), row(base + 1)            # reflect sources (left)
        cA, cB = row(base - 2), row(base - 1)            # what the roll used (left)
        rC, rD = row(base + T - 2), row(base + T - 3)    # reflect sources (right)
        cC, cD = row(base + T), row(base + T + 1)        # what the roll used (right)
        r0p.append(jnp.concatenate([rA, rB], axis=1))
        r0n.append(jnp.concatenate([cA, cB], axis=1))
        r1p.append(jnp.concatenate([rB, zero], axis=1))
        r1n.append(jnp.concatenate([cB, zero], axis=1))
        r2p.append(jnp.concatenate([zero, rC], axis=1))
        r2n.append(jnp.concatenate([zero, cC], axis=1))
        r3p.append(jnp.concatenate([rC, rD], axis=1))
        r3n.append(jnp.concatenate([cC, cD], axis=1))
    lmat = jnp.concatenate(r0p + r1p + r0n + r1n, axis=0).astype(jnp.bfloat16)  # (4Bb, 2CH)
    rmat = jnp.concatenate(r2p + r3p + r2n + r3n, axis=0).astype(jnp.bfloat16)  # (4Bb, 2CH)
    w_left = w_ref[layer, pl.ds(0, 2 * CH), :]       # [W0; W1]
    w_right = w_ref[layer, pl.ds(3 * CH, 2 * CH), :]  # [W3; W4]
    cl = jnp.dot(lmat, w_left, preferred_element_type=jnp.float32)    # (4Bb, CH)
    cr = jnp.dot(rmat, w_right, preferred_element_type=jnp.float32)   # (4Bb, CH)
    c0 = cl[0 * Bb:1 * Bb] - cl[2 * Bb:3 * Bb]       # row 0   : +reflect - circular
    c1 = cl[1 * Bb:2 * Bb] - cl[3 * Bb:4 * Bb]       # row 1
    c2 = cr[0 * Bb:1 * Bb] - cr[2 * Bb:3 * Bb]       # row T-2
    c3 = cr[1 * Bb:2 * Bb] - cr[3 * Bb:4 * Bb]       # row T-1

    # Scatter the 4 correction rows per element.  Kept as masked selects confined to
    # the (Bb, T_pad, CH) time view (value-level row updates have less certain Mosaic
    # lowering support than this proven form).
    acc3 = acc.reshape(Bb, T_pad, CH)
    t_row = lax.broadcasted_iota(jnp.int32, (T_pad, 1), 0).reshape(1, T_pad, 1)
    corr = (jnp.where(t_row == 0, c0[:, None, :], 0.0)
            + jnp.where(t_row == 1, c1[:, None, :], 0.0)
            + jnp.where(t_row == T - 2, c2[:, None, :], 0.0)
            + jnp.where(t_row == T - 1, c3[:, None, :], 0.0))
    return (acc3 + corr).reshape(M, CH) + b_ref[layer]


# ------------------------------------------------------------------
# fused kernel: input conv -> 8 resblocks -> output conv
# ------------------------------------------------------------------
def _vc_fused_kernel(x_ref, cs_ref, bias_ref,
                     w_in_ref, b_in_ref, wcs_ref,
                     w1_ref, b1_ref, w2_ref, b2_ref,
                     w_out_ref, b_out_ref,
                     o_ref, h_ref, *, Bb, T, T_pad, roll_sign):
    layer = pl.program_id(1)
    M = Bb * T_pad

    # --- first layer of this batch tile: input 1x1 conv into the resident activation ---
    @pl.when(layer == 0)
    def _():
        h_ref[...] = (jnp.dot(x_ref[...], w_in_ref[...],
                              preferred_element_type=jnp.float32) + b_in_ref[...])

    res = h_ref[...]                                     # (M, CH) f32, VMEM-resident

    # --- ChannelNorm: mean / unbiased var over 256 channels (torch.var default), eps=1e-4 ---
    mean = jnp.mean(res, axis=-1, keepdims=True)
    xc = res - mean
    var = jnp.sum(xc * xc, axis=-1, keepdims=True) * (1.0 / (CH - 1))
    h = xc * lax.rsqrt(var + EPS)

    # --- fused con_conv + spk_conv (one MXU matmul) + (bcon + bspk + time emb) bias ---
    h = h + jnp.dot(cs_ref[...], wcs_ref[layer], preferred_element_type=jnp.float32)
    bias = bias_ref[layer, 0]                            # (Bb, CH) f32
    h = (h.reshape(Bb, T_pad, CH) + bias[:, None, :]).reshape(M, CH)

    # --- conv1 (reflect pad 2) -> GELU -> conv2 (reflect pad 2) ---
    h = _conv5_reflect(h, w1_ref, b1_ref, layer,
                       Bb=Bb, T=T, T_pad=T_pad, roll_sign=roll_sign)
    h = _gelu_exact(h)
    h = _conv5_reflect(h, w2_ref, b2_ref, layer,
                       Bb=Bb, T=T, T_pad=T_pad, roll_sign=roll_sign)

    # --- residual, kept resident in VMEM across the layer axis ---
    h_new = res + h
    h_ref[...] = h_new

    # --- last layer: output 1x1 conv (lane-padded to 256) ---
    @pl.when(layer == pl.num_programs(1) - 1)
    def _():
        o_ref[...] = (jnp.dot(h_new.astype(jnp.bfloat16), w_out_ref[...],
                              preferred_element_type=jnp.float32) + b_out_ref[...])


def _vc_fused(x_flat, cs_flat, bias4, p, *, Bb, T, T_pad, roll_sign):
    nb = bias4.shape[1]
    M = Bb * T_pad
    kernel = functools.partial(_vc_fused_kernel, Bb=Bb, T=T, T_pad=T_pad,
                               roll_sign=roll_sign)
    rows2 = lambda i, l: (i, 0)        # activations: refetched only when batch tile changes
    const2 = lambda i, l: (0, 0)       # resident 2-D weights
    const3 = lambda i, l: (0, 0, 0)    # resident stacked per-layer weights
    return pl.pallas_call(
        kernel,
        out_shape=jax.ShapeDtypeStruct((nb * M, CH), jnp.float32),
        grid=(nb, NUM_LAYERS),
        in_specs=[
            pl.BlockSpec((M, CH), rows2),                                # x   (bf16)
            pl.BlockSpec((M, CH), rows2),                                # cs  (bf16)
            pl.BlockSpec((NUM_LAYERS, 1, Bb, CH), lambda i, l: (0, i, 0, 0)),  # bias (f32)
            pl.BlockSpec((CH, CH), const2),                              # w_in  (bf16)
            pl.BlockSpec((1, CH), const2),                               # b_in  (f32)
            pl.BlockSpec((NUM_LAYERS, CH, CH), const3),                  # wcs   (bf16, resident)
            pl.BlockSpec((NUM_LAYERS, K * CH, CH), const3),              # w1    (bf16, resident)
            pl.BlockSpec((NUM_LAYERS, 1, CH), const3),                   # b1    (f32, resident)
            pl.BlockSpec((NUM_LAYERS, K * CH, CH), const3),              # w2    (bf16, resident)
            pl.BlockSpec((NUM_LAYERS, 1, CH), const3),                   # b2    (f32, resident)
            pl.BlockSpec((CH, CH), const2),                              # w_out (bf16)
            pl.BlockSpec((1, CH), const2),                               # b_out (f32)
        ],
        out_specs=pl.BlockSpec((M, CH), rows2),
        scratch_shapes=[pltpu.VMEM((M, CH), jnp.float32)],               # resident activation
        compiler_params=pltpu.CompilerParams(
            dimension_semantics=("parallel", "arbitrary"),               # batch tiles || layers seq
            vmem_limit_bytes=_vmem_limit_bytes()),
    )(x_flat, cs_flat, bias4,
      p['w_in'], p['b_in'], p['wcs'],
      p['w1'], p['b1'], p['w2'], p['b2'],
      p['w_out'], p['b_out'])


# ------------------------------------------------------------------
# glue: time encoding, parameters, full forward
# ------------------------------------------------------------------
def time_embedding(t):
    # TimeEncoding1d: channels 0..127 = sin(t*pi*f_c), 128..255 = cos(t*pi*f_c)
    half = CH // 2
    factors = 1.0 / (MAX_T ** (jnp.arange(half, dtype=jnp.float32) / half))
    ang = t.astype(jnp.float32)[:, None] * math.pi * factors[None, :]
    return jnp.concatenate([jnp.sin(ang), jnp.cos(ang)], axis=-1)        # (B, CH)


def init_params(seed=0):
    # Deterministic synthetic weights (no checkpoint), stored in the fused layout:
    #   1x1 convs        -> channel-last (Cin, Cout), zero-padded to 256 lanes
    #   con+spk convs    -> one (256, 256): rows 0..3 = wcon, rows 4..131 = wspk, rest 0
    #   conv1/conv2      -> taps stacked along rows: (K*CH, CH), tap k = rows [k*CH,(k+1)*CH)
    # Matmul weights are kept in bf16; biases in f32.
    key = jax.random.PRNGKey(seed)
    k_in, k_out, k_layers = jax.random.split(key, 3)

    def mat(k, shape, fan_in):
        return jax.random.normal(k, shape, jnp.float32) / math.sqrt(fan_in)

    w_in = jnp.zeros((CH, CH), jnp.float32).at[:N_FREQ, :].set(
        mat(k_in, (N_FREQ, CH), N_FREQ))
    b_in = mat(jax.random.fold_in(k_in, 1), (1, CH), N_FREQ)

    w_out = jnp.zeros((CH, CH), jnp.float32).at[:, :N_FREQ].set(
        mat(k_out, (CH, N_FREQ), CH))
    b_out = jnp.zeros((1, CH), jnp.float32).at[:, :N_FREQ].set(
        mat(jax.random.fold_in(k_out, 1), (1, N_FREQ), CH))

    wcs, bias_cs, w1, b1, w2, b2 = [], [], [], [], [], []
    lkeys = jax.random.split(k_layers, NUM_LAYERS)
    for i in range(NUM_LAYERS):
        ks = jax.random.split(lkeys[i], 8)
        wcon = mat(ks[0], (BOTTLENECK, CH), BOTTLENECK)
        bcon = mat(ks[1], (CH,), BOTTLENECK)
        wspk = mat(ks[2], (D_SPK, CH), D_SPK)
        bspk = mat(ks[3], (CH,), D_SPK)
        wcs_l = jnp.zeros((CH, CH), jnp.float32)
        wcs_l = wcs_l.at[:BOTTLENECK].set(wcon)
        wcs_l = wcs_l.at[BOTTLENECK:BOTTLENECK + D_SPK].set(wspk)
        wcs.append(wcs_l)
        bias_cs.append(bcon + bspk)
        w1.append(mat(ks[4], (K * CH, CH), K * CH))
        b1.append(mat(ks[5], (1, CH), K * CH))
        w2.append(mat(ks[6], (K * CH, CH), K * CH))
        b2.append(mat(ks[7], (1, CH), K * CH))

    return {
        'w_in': w_in.astype(jnp.bfloat16), 'b_in': b_in,
        'w_out': w_out.astype(jnp.bfloat16), 'b_out': b_out,
        'wcs': jnp.stack(wcs).astype(jnp.bfloat16),           # (L, 256, 256)
        'bias_cs': jnp.stack(bias_cs),                        # (L, 256)  = bcon + bspk
        'w1': jnp.stack(w1).astype(jnp.bfloat16),             # (L, K*CH, CH)
        'b1': jnp.stack(b1),                                  # (L, 1, CH)
        'w2': jnp.stack(w2).astype(jnp.bfloat16),
        'b2': jnp.stack(b2),
    }


@functools.partial(jax.jit, static_argnums=(5,))
def _forward_jit(params, x, t, con, spk, roll_sign):
    # x: (B, 129, T), con: (B, 4, T), spk: (B, 128, T), t: (B,)  [PyTorch NCL layout]
    B, _, T = x.shape
    T_pad = _round_up(T, 8)                        # pltpu.roll path + clean (8,128) layouts
    bb_max = max(1, min(B, 256 // T_pad))          # fold batch rows toward MXU M ~ 256
    nb = _cdiv(B, bb_max)
    Bb = _cdiv(B, nb)
    B_pad = nb * Bb

    xt = jnp.transpose(x, (0, 2, 1)).astype(jnp.bfloat16)                 # (B, T, 129)
    xt = jnp.pad(xt, ((0, B_pad - B), (0, T_pad - T), (0, CH - N_FREQ)))
    cs = jnp.transpose(jnp.concatenate([con, spk], axis=1), (0, 2, 1)).astype(jnp.bfloat16)
    cs = jnp.pad(cs, ((0, B_pad - B), (0, T_pad - T), (0, CH - BOTTLENECK - D_SPK)))

    emb = time_embedding(jnp.pad(t, (0, B_pad - B)))                      # (B_pad, 256)
    bias = params['bias_cs'][:, None, :] + emb[None, :, :]                # (L, B_pad, 256)
    bias4 = bias.reshape(NUM_LAYERS, nb, Bb, CH)

    y_flat = _vc_fused(xt.reshape(B_pad * T_pad, CH),
                       cs.reshape(B_pad * T_pad, CH),
                       bias4, params, Bb=Bb, T=T, T_pad=T_pad, roll_sign=roll_sign)
    y = y_flat.reshape(B_pad, T_pad, CH)[:B, :T, :N_FREQ]                 # drop padding
    return jnp.transpose(y, (0, 2, 1))                                    # (B, 129, T)


def voice_convertor_forward(params, x, t, con, spk):
    if x.shape[-1] < 3:
        raise ValueError("reflect padding with pad=2 requires T >= 3")
    return _forward_jit(params, x, t, con, spk, _roll_sign())


# ------------------------------------------------------------------
# plain-XLA reference (same bf16-operand / f32-accumulate strategy)
# ------------------------------------------------------------------
def _reference_forward(params, x, t, con, spk):
    B, _, T = x.shape
    xt = jnp.pad(jnp.transpose(x, (0, 2, 1)), ((0, 0), (0, 0), (0, CH - N_FREQ)))
    h = (jnp.dot(xt.astype(jnp.bfloat16), params['w_in'],
                 preferred_element_type=jnp.float32) + params['b_in'])
    cs = jnp.transpose(jnp.concatenate([con, spk], axis=1), (0, 2, 1))
    cs = jnp.pad(cs, ((0, 0), (0, 0), (0, CH - BOTTLENECK - D_SPK))).astype(jnp.bfloat16)
    emb = time_embedding(t)

    def conv5(hin, w):
        hp = jnp.pad(hin, ((0, 0), (2, 2), (0, 0)), mode='reflect').astype(jnp.bfloat16)
        out = jnp.zeros_like(hin)
        for k in range(K):
            out = out + jnp.dot(hp[:, k:k + T, :], w[k * CH:(k + 1) * CH],
                                preferred_element_type=jnp.float32)
        return out

    for l in range(NUM_LAYERS):
        res = h
        mean = jnp.mean(h, axis=-1, keepdims=True)
        xc = h - mean
        var = jnp.sum(xc * xc, axis=-1, keepdims=True) / (CH - 1)
        hn = xc / jnp.sqrt(var + EPS)
        hn = (hn + jnp.dot(cs, params['wcs'][l], preferred_element_type=jnp.float32)
              + params['bias_cs'][l][None, None, :] + emb[:, None, :])
        hn = conv5(hn, params['w1'][l]) + params['b1'][l][None, :, :]
        hn = jnn.gelu(hn, approximate=False)
        hn = conv5(hn, params['w2'][l]) + params['b2'][l][None, :, :]
        h = res + hn
    y = (jnp.dot(h.astype(jnp.bfloat16), params['w_out'],
                 preferred_element_type=jnp.float32) + params['b_out'])
    return jnp.transpose(y[:, :, :N_FREQ], (0, 2, 1))


if __name__ == "__main__":
    params = init_params(0)
    key = jax.random.PRNGKey(0)
    # case 0: T % 8 == 0; case 1: ragged T (exercises the padded-time boundary path)
    for case, (B, T) in enumerate([(2, 16), (2, 13)]):
        ck = jax.random.fold_in(key, case)
        kx, kt, kc, ks = jax.random.split(ck, 4)
        x = jax.random.normal(kx, (B, N_FREQ, T), jnp.float32)
        tvec = jax.random.uniform(kt, (B,), jnp.float32, 0.0, 1000.0)
        con = jax.random.normal(kc, (B, BOTTLENECK, T), jnp.float32)
        spk = jax.random.normal(ks, (B, D_SPK, T), jnp.float32)

        y = voice_convertor_forward(params, x, tvec, con, spk)
        jax.block_until_ready(y)
        assert y.shape == (B, N_FREQ, T), y.shape
        assert bool(jnp.all(jnp.isfinite(y)))

        y_ref = _reference_forward(params, x, tvec, con, spk)
        err = float(jnp.max(jnp.abs(y - y_ref)) / (jnp.max(jnp.abs(y_ref)) + 1e-6))
        assert err < 2e-2, f"kernel/reference mismatch (case {case}): {err:.4e}"
    print("KERNEL_OK")
</pallas_src>

<mosaic_0001>
module attributes {stable_mosaic.version = 11 : i64} {
  func.func @_roll_probe_kernel(%arg0: memref<8x128xf32, #tpu.memory_space<vmem>>, %arg1: memref<8x128xf32, #tpu.memory_space<vmem>>) attributes {dimension_semantics = [], scalar_prefetch = 0 : i64, scratch_operands = 0 : i64, tpu.core_type = #tpu.core_type<tc>} {
    %c0 = arith.constant 0 : index
    %c0_0 = arith.constant 0 : index
    %0 = vector.load %arg0[%c0, %c0_0] : memref<8x128xf32, #tpu.memory_space<vmem>>, vector<8x128xf32>
    %c1_i32 = arith.constant 1 : i32
    %1 = tpu.dynamic_rotate %0 by %c1_i32 dim 0 : vector<8x128xf32>, i32 -> vector<8x128xf32>
    %c0_1 = arith.constant 0 : index
    %c0_2 = arith.constant 0 : index
    %2 = vector.load %arg1[%c0_1, %c0_2] : memref<8x128xf32, #tpu.memory_space<vmem>>, vector<8x128xf32>
    tpu.vector_store %arg1[%c0_1, %c0_2], %1 {strides = array<i32>} : memref<8x128xf32, #tpu.memory_space<vmem>>, vector<8x128xf32>,
    return
  }
}

</mosaic_0001>

<bundles_post_ra>
// kernel: tpu_custom_call.1
= control target key start
LH: loop header
LB: loop body
LE: loop exit
PB: predicated region body
PF: predicated region fallthrough
CT: control target
= control target key end

     0   :  { %6 = vsyncpa [#allocation3], 0  ;;  %s103_s0 = inlined_call_operand.hbm [shape: f32[8,128], index: 0, kind: input, shape index: {}]   ;;  %s104_s1 = inlined_call_operand.hbm [shape: f32[8,128], index: 1, kind: output, shape index: {}]  }
   0x1   :  { %7 = vsyncpa [#allocation4], 0  ;;  %s85_s6 = smov [#allocation2]  }
   0x2   :  { %s14_s7 = sshll.u32 %s85_s6, 4  ;;  %s15_s7 = int_to_ptr.vmem [resolvable:$true] %s14_s7 }
   0x3   :  { %s49_s8 = scalar_lea.vmem %s15_s7, 128  ;;  %p54_p1 = scmp.lt.s32.totalorder %s15_s7, %s15_s7 }
   0x4   :  { %p50_p0 = scmp.ne.s32.totalorder %s15_s7, %s49_s8  ;;  %p55_p2 = scmp.lt.s32.totalorder %s49_s8, %s49_s8 }
   0x6   :  { %p56_p3 = por %p55_p2, %p54_p1 }
   0x8   :  { %p57_p4 = pnand %p56_p3, %p50_p0 }
   0xa   :  { %60 = shalt.err (!%p57_p4)
}
   0xb   :  { %17 = dma.hbm_to_vmem [thread:$0]  %s103_s0, 128, %s15_s7, [#allocation3]  }
   0xc   :  { %81 = dma.done.wait [#allocation3], 128  }
   0xd   :  { %82 = vsyncadd [#allocation3], 4294967168  ;;  %s86_s11 = smov [#allocation5]   ;;  %v21_v0 = vld [vmem:[#allocation2] sm:$0xff] }
   0xe   :  { %s30_s12 = sshll.u32 %s86_s11, 4  ;;  %v22_v1 = vrot.slane %v21_v0, 7  ;;  %s31_s12 = int_to_ptr.vmem [resolvable:$true] %s30_s12 }
   0xf   :  { %s61_s13 = scalar_lea.vmem %s31_s12, 128  ;;  %p66_p6 = scmp.lt.s32.totalorder %s31_s12, %s31_s12 }
  0x10   :  { %23 = vst [vmem:[#allocation5] sm:$0xff] %v22_v1  ;;  %p62_p5 = scmp.ne.s32.totalorder %s31_s12, %s61_s13  ;;  %p67_p7 = scmp.lt.s32.totalorder %s61_s13, %s61_s13 }
  0x12   :  { %p68_p8 = por %p67_p7, %p66_p6 }
  0x14   :  { %p69_p9 = pnand %p68_p8, %p62_p5 }
  0x16   :  { %72 = shalt.err (!%p69_p9)
}
  0x17   :  { %33 = dma.vmem_to_hbm [thread:$0]  %s31_s12, 128, %s104_s1, [#allocation4]  }
  0x18   :  { %83 = dma.done.wait [#allocation4], 128  }
  0x19   :  { %84 = vsyncadd [#allocation4], 4294967168 }
  0x1a   :  { %37 = vsyncpa [#allocation3], 1 }
  0x1b   :  { %38 = vsyncpa [#allocation4], 1 }

</bundles_post_ra>
